<compile_context>
chip_gen: v6e
topology: v6e:2x2x1
jax: 0.10.0
libtpu: 0.0.40
codegen_flags: <defaults>
</compile_context>

<pallas_src>
import functools

import jax
import jax.numpy as jnp
from jax.experimental import pallas as pl
from jax.experimental.pallas import tpu as pltpu


def _encoder_kernel(static_ref, idx_ref, rhs_ref, out_ref, *,
                    static_dim, drug_vocab, drug_len, comorb_len, k_pad):
    tb = static_ref.shape[0]
    drug_off = static_dim + 1          # lane where the drug-count block starts
    comorb_off = drug_off + drug_vocab  # lane where the comorb-count block starts

    lane = jax.lax.broadcasted_iota(jnp.int32, (tb, k_pad), 1)

    # Fused LHS, built in place:
    #   lanes [0:static_dim]        -> static features
    #   lane  static_dim            -> constant 1 (bias row of the RHS)
    #   lanes [drug_off:+Vd]        -> drug index histogram
    #   lanes [comorb_off:+Vc]      -> comorb index histogram
    #   remaining lanes (pad to 128)-> 0
    lhs = jnp.concatenate(
        [static_ref[...],
         jnp.zeros((tb, k_pad - static_dim), jnp.float32)], axis=1)
    lhs = lhs + (lane == static_dim).astype(jnp.float32)

    # 2-D histogram accumulation: one VPU compare+add per sequence position,
    # one-hots land directly at their final lane offsets (no concat/rotate).
    idx = idx_ref[...]                       # (tb, drug_len + comorb_len) int32
    drug_lane = lane - drug_off
    comorb_lane = lane - comorb_off
    for l in range(drug_len):
        lhs = lhs + (drug_lane == idx[:, l:l + 1]).astype(jnp.float32)
    for l in range(comorb_len):
        col = idx[:, drug_len + l:drug_len + l + 1]
        lhs = lhs + (comorb_lane == col).astype(jnp.float32)

    # Single block-diagonal MXU matmul (bias + 1/L already folded into rhs).
    out_ref[...] = jnp.dot(lhs, rhs_ref[...], preferred_element_type=jnp.float32)


def pack_encoder_params(params, drug_len, comorb_len):
    """One-time parameter packing (call at load time, NOT per forward).

    Builds the block-diagonal RHS with the bias as an extra row and 1/L folded
    into the embedding-table blocks, padded to K=128 rows (MXU-friendly).
    """
    w = params["w"].astype(jnp.float32)                 # (hidden, static)
    b = params["b"].astype(jnp.float32)                 # (hidden,)
    drug_tab = params["drug_tab"].astype(jnp.float32)   # (Vd, E), row 0 == 0
    comorb_tab = params["comorb_tab"].astype(jnp.float32)  # (Vc, E), row 0 == 0
    hidden_dim, static_dim = w.shape
    drug_vocab, emb_dim = drug_tab.shape
    comorb_vocab = comorb_tab.shape[0]
    out_dim = hidden_dim + 2 * emb_dim

    drug_off = static_dim + 1
    comorb_off = drug_off + drug_vocab
    k = comorb_off + comorb_vocab
    k_pad = ((k + 127) // 128) * 128

    rhs = jnp.zeros((k_pad, out_dim), jnp.float32)
    rhs = rhs.at[:static_dim, :hidden_dim].set(w.T)
    rhs = rhs.at[static_dim, :hidden_dim].set(b)                      # bias row
    rhs = rhs.at[drug_off:drug_off + drug_vocab,
                 hidden_dim:hidden_dim + emb_dim].set(drug_tab / float(drug_len))
    rhs = rhs.at[comorb_off:comorb_off + comorb_vocab,
                 hidden_dim + emb_dim:out_dim].set(comorb_tab / float(comorb_len))

    return {
        "rhs": rhs,
        "static_dim": static_dim,
        "drug_vocab": drug_vocab,
        "comorb_vocab": comorb_vocab,
        "drug_len": drug_len,
        "comorb_len": comorb_len,
        "out_dim": out_dim,
        "k_pad": k_pad,
    }


def _choose_batch_tile(batch, target=1024):
    """Divisor of `batch`, <= target, multiple of 8 when possible; prefer >= 2
    grid steps so v7x's two TensorCores both get work on the parallel axis."""
    for tb in range(min(target, batch // 2), 7, -1):
        if batch % tb == 0 and tb % 8 == 0:
            return tb
    for tb in range(min(target, batch), 7, -1):
        if batch % tb == 0 and tb % 8 == 0:
            return tb
    return batch   # small / awkward batches: single full-batch block


def static_embedder_encoder(static_tensor, drug_padded, comorb_padded, packed):
    """Pallas forward.  drug_padded / comorb_padded are 0-padded (B, L) ints."""
    batch, static_dim = static_tensor.shape
    assert static_dim == packed["static_dim"]
    assert drug_padded.shape[1] == packed["drug_len"]
    assert comorb_padded.shape[1] == packed["comorb_len"]

    # Single merged index input (fewer DMA descriptors per grid step).
    idx = jnp.concatenate(
        [drug_padded.astype(jnp.int32), comorb_padded.astype(jnp.int32)], axis=1)
    seq = idx.shape[1]

    k_pad = packed["k_pad"]
    out_dim = packed["out_dim"]
    tb = _choose_batch_tile(batch)
    grid = (batch // tb,)

    kernel = functools.partial(
        _encoder_kernel,
        static_dim=static_dim,
        drug_vocab=packed["drug_vocab"],
        drug_len=packed["drug_len"],
        comorb_len=packed["comorb_len"],
        k_pad=k_pad,
    )

    return pl.pallas_call(
        kernel,
        out_shape=jax.ShapeDtypeStruct((batch, out_dim), jnp.float32),
        grid_spec=pltpu.PrefetchScalarGridSpec(
            num_scalar_prefetch=0,
            grid=grid,
            in_specs=[
                pl.BlockSpec((tb, static_dim), lambda i: (i, 0)),
                pl.BlockSpec((tb, seq), lambda i: (i, 0)),
                pl.BlockSpec((k_pad, out_dim), lambda i: (0, 0)),
            ],
            out_specs=pl.BlockSpec((tb, out_dim), lambda i: (i, 0)),
        ),
        compiler_params=pltpu.CompilerParams(dimension_semantics=("parallel",)),
    )(static_tensor.astype(jnp.float32), idx, packed["rhs"])


def _reference(static_tensor, drug_padded, comorb_padded, params):
    drug_emb = params["drug_tab"][drug_padded]        # (B, Ld, E)
    comorb_emb = params["comorb_tab"][comorb_padded]  # (B, Lc, E)
    static_repr = static_tensor @ params["w"].T + params["b"]
    return jnp.concatenate(
        [static_repr, drug_emb.mean(axis=1), comorb_emb.mean(axis=1)], axis=1)


if __name__ == "__main__":
    # Module hyper-parameters (small, consistent with __init__).
    batch = 8
    static_dim = 8
    hidden_dim = 32
    emb_dim = 16
    unique_drugs_size = 11       # -> drug vocab 12 (row 0 = padding)
    unique_comorbities_size = 7  # -> comorb vocab 8 (row 0 = padding)
    drug_len = 6                 # max padded drug-sequence length
    comorb_len = 5               # max padded comorbidity-sequence length

    key = jax.random.PRNGKey(0)
    k1, k2, k3, k4, k5, k6, k7 = jax.random.split(key, 7)

    # Deterministic parameter init (padding_idx=0 row zeroed, as nn.Embedding does).
    drug_tab = jax.random.normal(k1, (unique_drugs_size + 1, emb_dim), jnp.float32)
    drug_tab = drug_tab.at[0].set(0.0)
    comorb_tab = jax.random.normal(k2, (unique_comorbities_size + 1, emb_dim), jnp.float32)
    comorb_tab = comorb_tab.at[0].set(0.0)
    w = jax.random.normal(k3, (hidden_dim, static_dim), jnp.float32) * 0.1
    b = jax.random.normal(k4, (hidden_dim,), jnp.float32) * 0.1
    params = {"drug_tab": drug_tab, "comorb_tab": comorb_tab, "w": w, "b": b}

    # One-time parameter packing (hoisted out of the per-call path).
    packed = pack_encoder_params(params, drug_len, comorb_len)

    # Inputs.  Ragged index lists are represented already right-padded with 0,
    # matching nn.utils.rnn.pad_sequence(batch_first=True).
    # TODO(synk): the ragged-Python-list -> pad_sequence step itself stays on host.
    static_tensor = jax.random.normal(k5, (batch, static_dim), jnp.float32)
    drug_padded = jax.random.randint(k6, (batch, drug_len), 1, unique_drugs_size + 1)
    drug_padded = drug_padded.at[0, 4:].set(0).at[2, 2:].set(0)   # variable lengths
    comorb_padded = jax.random.randint(k7, (batch, comorb_len), 1, unique_comorbities_size + 1)
    comorb_padded = comorb_padded.at[1, 3:].set(0).at[3, 1:].set(0)

    out = static_embedder_encoder(static_tensor, drug_padded, comorb_padded, packed)
    out = jax.block_until_ready(out)

    ref = _reference(static_tensor, drug_padded, comorb_padded, params)
    assert out.shape == (batch, hidden_dim + 2 * emb_dim), out.shape
    assert jnp.allclose(out, ref, atol=1e-5, rtol=1e-5), "mismatch vs. JAX reference"
    print("KERNEL_OK")
</pallas_src>

<mosaic_0001>
module attributes {stable_mosaic.version = 11 : i64} {
  func.func @_encoder_kernel(%arg0: i32, %arg1: memref<8x8xf32, #tpu.memory_space<vmem>>, %arg2: memref<8x11xi32, #tpu.memory_space<vmem>>, %arg3: memref<128x64xf32, #tpu.memory_space<vmem>>, %arg4: memref<8x64xf32, #tpu.memory_space<vmem>>) attributes {dimension_semantics = [#tpu.dimension_semantics<parallel>], iteration_bounds = array<i64: 1>, scalar_prefetch = 0 : i64, scratch_operands = 0 : i64, tpu.core_type = #tpu.core_type<tc>, window_params = [{transform_indices = @transform_0, window_bounds = array<i64: 8, 8>}, {transform_indices = @transform_1, window_bounds = array<i64: 8, 11>}, {pipeline_mode = #tpu.pipeline_mode<synchronous>, transform_indices = @transform_2, window_bounds = array<i64: 128, 64>}, {transform_indices = @transform_3, window_bounds = array<i64: 8, 64>}]} {
    %0 = tpu.iota {dimensions = array<i32: 1>} : vector<8x128xi32>
    %c0 = arith.constant 0 : index
    %c0_0 = arith.constant 0 : index
    %1 = vector.load %arg1[%c0, %c0_0] : memref<8x8xf32, #tpu.memory_space<vmem>>, vector<8x8xf32>
    %cst = arith.constant 0.000000e+00 : f32
    %2 = vector.broadcast %cst : f32 to vector<8x120xf32>
    %3 = tpu.concatenate %1, %2 in 1 : vector<8x8xf32>, vector<8x120xf32> -> vector<8x128xf32>
    %c8_i32 = arith.constant 8 : i32
    %4 = vector.broadcast %c8_i32 : i32 to vector<8x128xi32>
    %5 = arith.cmpi eq, %0, %4 : vector<8x128xi32>
    %6 = arith.extui %5 : vector<8x128xi1> to vector<8x128xi32>
    %7 = arith.sitofp %6 : vector<8x128xi32> to vector<8x128xf32>
    %8 = arith.addf %3, %7 : vector<8x128xf32>
    %c0_1 = arith.constant 0 : index
    %c0_2 = arith.constant 0 : index
    %9 = vector.load %arg2[%c0_1, %c0_2] : memref<8x11xi32, #tpu.memory_space<vmem>>, vector<8x11xi32>
    %c9_i32 = arith.constant 9 : i32
    %10 = vector.broadcast %c9_i32 : i32 to vector<8x128xi32>
    %11 = arith.subi %0, %10 : vector<8x128xi32>
    %c21_i32 = arith.constant 21 : i32
    %12 = vector.broadcast %c21_i32 : i32 to vector<8x128xi32>
    %13 = arith.subi %0, %12 : vector<8x128xi32>
    %14 = vector.extract_strided_slice %9 {offsets = [0, 0], sizes = [8, 1], strides = [1, 1]} : vector<8x11xi32> to vector<8x1xi32>
    %15 = vector.broadcast %14 : vector<8x1xi32> to vector<8x128xi32>
    %16 = arith.cmpi eq, %11, %15 : vector<8x128xi32>
    %17 = arith.extui %16 : vector<8x128xi1> to vector<8x128xi32>
    %18 = arith.sitofp %17 : vector<8x128xi32> to vector<8x128xf32>
    %19 = arith.addf %8, %18 : vector<8x128xf32>
    %20 = vector.extract_strided_slice %9 {offsets = [0, 1], sizes = [8, 1], strides = [1, 1]} : vector<8x11xi32> to vector<8x1xi32>
    %21 = vector.broadcast %20 : vector<8x1xi32> to vector<8x128xi32>
    %22 = arith.cmpi eq, %11, %21 : vector<8x128xi32>
    %23 = arith.extui %22 : vector<8x128xi1> to vector<8x128xi32>
    %24 = arith.sitofp %23 : vector<8x128xi32> to vector<8x128xf32>
    %25 = arith.addf %19, %24 : vector<8x128xf32>
    %26 = vector.extract_strided_slice %9 {offsets = [0, 2], sizes = [8, 1], strides = [1, 1]} : vector<8x11xi32> to vector<8x1xi32>
    %27 = vector.broadcast %26 : vector<8x1xi32> to vector<8x128xi32>
    %28 = arith.cmpi eq, %11, %27 : vector<8x128xi32>
    %29 = arith.extui %28 : vector<8x128xi1> to vector<8x128xi32>
    %30 = arith.sitofp %29 : vector<8x128xi32> to vector<8x128xf32>
    %31 = arith.addf %25, %30 : vector<8x128xf32>
    %32 = vector.extract_strided_slice %9 {offsets = [0, 3], sizes = [8, 1], strides = [1, 1]} : vector<8x11xi32> to vector<8x1xi32>
    %33 = vector.broadcast %32 : vector<8x1xi32> to vector<8x128xi32>
    %34 = arith.cmpi eq, %11, %33 : vector<8x128xi32>
    %35 = arith.extui %34 : vector<8x128xi1> to vector<8x128xi32>
    %36 = arith.sitofp %35 : vector<8x128xi32> to vector<8x128xf32>
    %37 = arith.addf %31, %36 : vector<8x128xf32>
    %38 = vector.extract_strided_slice %9 {offsets = [0, 4], sizes = [8, 1], strides = [1, 1]} : vector<8x11xi32> to vector<8x1xi32>
    %39 = vector.broadcast %38 : vector<8x1xi32> to vector<8x128xi32>
    %40 = arith.cmpi eq, %11, %39 : vector<8x128xi32>
    %41 = arith.extui %40 : vector<8x128xi1> to vector<8x128xi32>
    %42 = arith.sitofp %41 : vector<8x128xi32> to vector<8x128xf32>
    %43 = arith.addf %37, %42 : vector<8x128xf32>
    %44 = vector.extract_strided_slice %9 {offsets = [0, 5], sizes = [8, 1], strides = [1, 1]} : vector<8x11xi32> to vector<8x1xi32>
    %45 = vector.broadcast %44 : vector<8x1xi32> to vector<8x128xi32>
    %46 = arith.cmpi eq, %11, %45 : vector<8x128xi32>
    %47 = arith.extui %46 : vector<8x128xi1> to vector<8x128xi32>
    %48 = arith.sitofp %47 : vector<8x128xi32> to vector<8x128xf32>
    %49 = arith.addf %43, %48 : vector<8x128xf32>
    %50 = vector.extract_strided_slice %9 {offsets = [0, 6], sizes = [8, 1], strides = [1, 1]} : vector<8x11xi32> to vector<8x1xi32>
    %51 = vector.broadcast %50 : vector<8x1xi32> to vector<8x128xi32>
    %52 = arith.cmpi eq, %13, %51 : vector<8x128xi32>
    %53 = arith.extui %52 : vector<8x128xi1> to vector<8x128xi32>
    %54 = arith.sitofp %53 : vector<8x128xi32> to vector<8x128xf32>
    %55 = arith.addf %49, %54 : vector<8x128xf32>
    %56 = vector.extract_strided_slice %9 {offsets = [0, 7], sizes = [8, 1], strides = [1, 1]} : vector<8x11xi32> to vector<8x1xi32>
    %57 = vector.broadcast %56 : vector<8x1xi32> to vector<8x128xi32>
    %58 = arith.cmpi eq, %13, %57 : vector<8x128xi32>
    %59 = arith.extui %58 : vector<8x128xi1> to vector<8x128xi32>
    %60 = arith.sitofp %59 : vector<8x128xi32> to vector<8x128xf32>
    %61 = arith.addf %55, %60 : vector<8x128xf32>
    %62 = vector.extract_strided_slice %9 {offsets = [0, 8], sizes = [8, 1], strides = [1, 1]} : vector<8x11xi32> to vector<8x1xi32>
    %63 = vector.broadcast %62 : vector<8x1xi32> to vector<8x128xi32>
    %64 = arith.cmpi eq, %13, %63 : vector<8x128xi32>
    %65 = arith.extui %64 : vector<8x128xi1> to vector<8x128xi32>
    %66 = arith.sitofp %65 : vector<8x128xi32> to vector<8x128xf32>
    %67 = arith.addf %61, %66 : vector<8x128xf32>
    %68 = vector.extract_strided_slice %9 {offsets = [0, 9], sizes = [8, 1], strides = [1, 1]} : vector<8x11xi32> to vector<8x1xi32>
    %69 = vector.broadcast %68 : vector<8x1xi32> to vector<8x128xi32>
    %70 = arith.cmpi eq, %13, %69 : vector<8x128xi32>
    %71 = arith.extui %70 : vector<8x128xi1> to vector<8x128xi32>
    %72 = arith.sitofp %71 : vector<8x128xi32> to vector<8x128xf32>
    %73 = arith.addf %67, %72 : vector<8x128xf32>
    %74 = vector.extract_strided_slice %9 {offsets = [0, 10], sizes = [8, 1], strides = [1, 1]} : vector<8x11xi32> to vector<8x1xi32>
    %75 = vector.broadcast %74 : vector<8x1xi32> to vector<8x128xi32>
    %76 = arith.cmpi eq, %13, %75 : vector<8x128xi32>
    %77 = arith.extui %76 : vector<8x128xi1> to vector<8x128xi32>
    %78 = arith.sitofp %77 : vector<8x128xi32> to vector<8x128xf32>
    %79 = arith.addf %73, %78 : vector<8x128xf32>
    %c0_3 = arith.constant 0 : index
    %c0_4 = arith.constant 0 : index
    %80 = vector.load %arg3[%c0_3, %c0_4] : memref<128x64xf32, #tpu.memory_space<vmem>>, vector<128x64xf32>
    %cst_5 = arith.constant dense<0.000000e+00> : vector<8x64xf32>
    %81 = tpu.matmul %79, %80, %cst_5 {dimension_numbers = #tpu.dot_dimension_numbers<[1], [0], [0], [1], [0, 0, 1, 1], [], []>} : vector<8x128xf32>, vector<128x64xf32>, vector<8x64xf32> -> vector<8x64xf32>
    %c0_6 = arith.constant 0 : index
    %c0_7 = arith.constant 0 : index
    %82 = vector.load %arg4[%c0_6, %c0_7] : memref<8x64xf32, #tpu.memory_space<vmem>>, vector<8x64xf32>
    tpu.vector_store %arg4[%c0_6, %c0_7], %81 {strides = array<i32>} : memref<8x64xf32, #tpu.memory_space<vmem>>, vector<8x64xf32>,
    return
  }
  func.func @transform_0(%arg0: i32) -> (i32, i32) {
    %c0_i32 = arith.constant 0 : i32
    %c0_i32_0 = arith.constant 0 : i32
    return %arg0, %c0_i32 : i32, i32
  }
  func.func @transform_1(%arg0: i32) -> (i32, i32) {
    %c0_i32 = arith.constant 0 : i32
    %c0_i32_0 = arith.constant 0 : i32
    return %arg0, %c0_i32 : i32, i32
  }
  func.func @transform_2(%arg0: i32) -> (i32, i32) {
    %c0_i32 = arith.constant 0 : i32
    %c0_i32_0 = arith.constant 0 : i32
    %c0_i32_1 = arith.constant 0 : i32
    return %c0_i32, %c0_i32_0 : i32, i32
  }
  func.func @transform_3(%arg0: i32) -> (i32, i32) {
    %c0_i32 = arith.constant 0 : i32
    %c0_i32_0 = arith.constant 0 : i32
    return %arg0, %c0_i32 : i32, i32
  }
}

</mosaic_0001>

<bundles_post_ra>
// kernel: tpu_custom_call.1
= control target key start
LH: loop header
LB: loop body
LE: loop exit
PB: predicated region body
PF: predicated region fallthrough
CT: control target
= control target key end

     0   :  { %v320_v1 = vmov 2   ;;  %v321_v2 = vmov 0   ;;  %s453_s0 = inlined_call_operand.vmem [shape: f32[8,8], index: 0, kind: input, shape index: {}]   ;;  %s454_s1 = inlined_call_operand.vmem [shape: s32[8,11], index: 1, kind: input, shape index: {}]   ;;  %s455_s2 = inlined_call_operand.vmem [shape: f32[128,64], index: 2, kind: input, shape index: {}]   ;;  %s456_s3 = inlined_call_operand.hbm [shape: f32[8,64], index: 3, kind: output, shape index: {}]  }
   0x1   :  { %v357_v0 = vld [vmem:[%s454_s1] sm:$0xff]  ;;  %288 = vset.pattern.permute.xlu1 %v320_v1  ;;  %286 = vset.pattern.permute.xlu0 %v321_v2  ;;  %v119_v3 = vld [vmem:[%s455_s2 + $0x78] sm:$0xff] }
   0x2   :  { %42 = vperm.xlu1 %288, %v357_v0   ;;  %28 = vperm.xlu0 %286, %v357_v0  }
   0x3   :  { %8 = vsyncpa [#allocation3], 0  ;;  %v322_v4 = vmov 0.0   ;;  %v323_v5 = vmov 3   ;;  %v324_v6 = vmov 1   ;;  %v118_v7 = vld [vmem:[%s455_s2 + $0x70] sm:$0xff]  ;;  %v15_v29 = vlaneseq }
   0x4   :  { %237 = vmatprep.subr.mxu0 %v322_v4  ;;  %v117_v8 = vld [vmem:[%s455_s2 + $0x68] sm:$0xff]  ;;  %v325_v9 = vmov 4   ;;  %v326_v10 = vmov 5   ;;  %v116_v11 = vld [vmem:[%s455_s2 + $0x60] sm:$0xff]  ;;  %v327_v12 = vmov 6   ;;  %v328_v13 = vmov 8  }
   0x5   :  { %238 = vmatpush3.msra.mxu0 %v119_v3  ;;  %v115_v14 = vld [vmem:[%s455_s2 + $0x58] sm:$0xff]  ;;  %v114_v15 = vld [vmem:[%s455_s2 + $0x50] sm:$0xff]  ;;  %v113_v16 = vld [vmem:[%s455_s2 + $0x48] sm:$0xff]  ;;  %v329_v17 = vmov 7   ;;  %v330_v19 = vmov 10   ;;  %v331_v21 = vmov 9  }
   0x6   :  { %289 = vset.pattern.permute.xlu1 %v323_v5  ;;  %287 = vset.pattern.permute.xlu0 %v324_v6  ;;  %v112_v18 = vld [vmem:[%s455_s2 + $0x40] sm:$0xff]  ;;  %v111_v20 = vld [vmem:[%s455_s2 + $0x38] sm:$0xff]  ;;  %v110_v22 = vld [vmem:[%s455_s2 + $0x30] sm:$0xff]  ;;  %vm332_vm0 = vmmov 0   ;;  %v16_v30 = vand.u32 127, %v15_v29  ;;  %vm18_vm1 = vcmask 64512  }
   0x7   :  { %49 = vperm.xlu1 %289, %v357_v0   ;;  %35 = vperm.xlu0 %287, %v357_v0   ;;  %v109_v23 = vld [vmem:[%s455_s2 + $0x28] sm:$0xff]  ;;  %v108_v24 = vld [vmem:[%s455_s2 + $0x20] sm:$0xff]  ;;  %v107_v25 = vld [vmem:[%s455_s2 + $0x18] sm:$0xff]  ;;  %vm190_vm14 = vcmask 523264  }
   0x8   :  { %239 = vmatprep.subr.mxu0 %v322_v4  ;;  %269 = vmatprep.mubr.msk.f32.mxu0 %vm332_vm0, %v322_v4  ;;  %v106_v26 = vld [vmem:[%s455_s2 + $0x10] sm:$0xff]  ;;  %v105_v27 = vld [vmem:[%s455_s2 + $0x8] sm:$0xff]  ;;  %v104_v28 = vld [vmem:[%s455_s2] sm:$0xff]  ;;  %vm20_vm2 = vcmp.eq.s32.totalorder %v16_v30, 8  ;;  %v207_v34 = vadd.s32 4294967287, %v16_v30  ;;  %v208_v51 = vadd.s32 4294967275, %v16_v30 }
   0x9   :  { %240 = vmatpush3.msra.mxu0 %v118_v7  ;;  %v17_v31 = vld [vmem:[%s453_s0] sm:$0xff]  ;;  %v206_v33 = vsel %vm20_vm2, 1.0, %v322_v4  ;;  %s333_s0 = smov [#allocation2]  }
   0xa   :  { %241 = vmatprep.subr.mxu0 %v322_v4  ;;  %v19_v32 = vsel %vm18_vm1, %v17_v31, 0.0  ;;  %s198_s2 = sshll.u32 %s333_s0, 4  ;;  %s199_s2 = int_to_ptr.vmem [resolvable:$true] %s198_s2 }
   0xb   :  { %290 = vset.pattern.permute.xlu1 %v325_v9  ;;  %291 = vset.pattern.permute.xlu0 %v326_v10  ;;  %v23_v37 = vadd.f32 %v206_v33, %v19_v32  ;;  %s298_s19 = scalar_lea.vmem %s199_s2, 128  ;;  %p303_p1 = scmp.lt.s32.totalorder %s199_s2, %s199_s2 }
   0xc   :  { %56 = vperm.xlu1 %290, %v357_v0   ;;  %63 = vperm.xlu0 %291, %v357_v0   ;;  %p299_p0 = scmp.ne.s32.totalorder %s199_s2, %s298_s19  ;;  %p304_p2 = scmp.lt.s32.totalorder %s298_s19, %s298_s19 }
   0xd   :  { %242 = vmatpush3.msra.mxu0 %v117_v8 }
   0xe   :  { %243 = vmatprep.subr.mxu0 %v322_v4  ;;  %p305_p3 = por %p304_p2, %p303_p1 }
   0xf   :  { %244 = vmatpush3.msra.mxu0 %v116_v11 }
  0x10   :  { %292 = vset.pattern.permute.xlu1 %v327_v12  ;;  %294 = vset.pattern.permute.xlu0 %v328_v13  ;;  %p306_p4 = pnand %p305_p3, %p299_p0 }
  0x11   :  { %70 = vperm.xlu1 %292, %v357_v0   ;;  %84 = vperm.xlu0 %294, %v357_v0  }
  0x12   :  { %245 = vmatprep.subr.mxu0 %v322_v4 }
  0x13   :  { %246 = vmatpush3.msra.mxu0 %v115_v14 }
  0x14   :  { %247 = vmatprep.subr.mxu0 %v322_v4 }
  0x15   :  { %293 = vset.pattern.permute.xlu1 %v329_v17  ;;  %248 = vmatpush3.msra.mxu0 %v114_v15 }
  0x16   :  { %77 = vperm.xlu1 %293, %v357_v0   ;;  %249 = vmatprep.subr.mxu0 %v322_v4 }
  0x17   :  { %250 = vmatpush3.msra.mxu0 %v113_v16  ;;  %297 = vset.pattern.permute.xlu0 %v330_v19 }
  0x18   :  { %251 = vmatprep.subr.mxu0 %v322_v4 }
  0x19   :  { %252 = vmatpush3.msra.mxu0 %v112_v18 }
  0x1a   :  { %295 = vset.pattern.permute.xlu1 %v331_v21  ;;  %253 = vmatprep.subr.mxu0 %v322_v4 }
  0x1b   :  { %91 = vperm.xlu1 %295, %v357_v0   ;;  %254 = vmatpush3.msra.mxu0 %v111_v20 }
  0x1c   :  { %255 = vmatprep.subr.mxu0 %v322_v4 }
  0x1d   :  { %256 = vmatpush3.msra.mxu0 %v110_v22 }
  0x1e   :  { %257 = vmatprep.subr.mxu0 %v322_v4 }
  0x1f   :  { %296 = vset.pattern.permute.xlu1 %v330_v19  ;;  %258 = vmatpush3.msra.mxu0 %v109_v23 }
  0x20   :  { %98 = vperm.xlu1 %296, %v357_v0   ;;  %259 = vmatprep.subr.mxu0 %v322_v4 }
  0x21   :  { %260 = vmatpush3.msra.mxu0 %v108_v24 }
  0x22   :  { %261 = vmatprep.subr.mxu0 %v322_v4 }
  0x23   :  { %262 = vmatpush3.msra.mxu0 %v107_v25 }
  0x24   :  { %263 = vmatprep.subr.mxu0 %v322_v4 }
  0x25   :  { %264 = vmatpush3.msra.mxu0 %v106_v26 }
  0x26   :  { %265 = vmatprep.subr.mxu0 %v322_v4 }
  0x27   :  { %266 = vmatpush3.msra.mxu0 %v105_v27 }
  0x28   :  { %267 = vmatprep.subr.mxu0 %v322_v4 }
  0x29   :  { %268 = vmatpush3.msra.mxu0 %v104_v28 }
  0x7d   :  { %v43_v35 = vpop.permute.xlu1 %42  ;;  %v29_v36 = vpop.permute.xlu0 %28 }
  0x7e   :  { %vm30_vm3 = vcmp.eq.s32.totalorder %v207_v34, %v29_v36  ;;  %vm44_vm4 = vcmp.eq.s32.totalorder %v207_v34, %v43_v35 }
  0x7f   :  { %v209_v38 = vsel %vm30_vm3, 1.0, %v322_v4  ;;  %v211_v44 = vsel %vm44_vm4, 1.0, %v322_v4 }
  0x80   :  { %v33_v39 = vadd.f32 %v209_v38, %v23_v37 }
  0x82   :  { %v50_v40 = vpop.permute.xlu1 %49  ;;  %v36_v41 = vpop.permute.xlu0 %35 }
  0x83   :  { %vm37_vm5 = vcmp.eq.s32.totalorder %v207_v34, %v36_v41  ;;  %vm51_vm6 = vcmp.eq.s32.totalorder %v207_v34, %v50_v40 }
  0x84   :  { %v210_v42 = vsel %vm37_vm5, 1.0, %v322_v4  ;;  %v212_v48 = vsel %vm51_vm6, 1.0, %v322_v4 }
  0x85   :  { %v40_v43 = vadd.f32 %v210_v42, %v33_v39 }
  0x87   :  { %v47_v45 = vadd.f32 %v211_v44, %v40_v43  ;;  %v57_v46 = vpop.permute.xlu1 %56  ;;  %v64_v47 = vpop.permute.xlu0 %63 }
  0x88   :  { %vm58_vm7 = vcmp.eq.s32.totalorder %v207_v34, %v57_v46  ;;  %vm65_vm8 = vcmp.eq.s32.totalorder %v207_v34, %v64_v47 }
  0x89   :  { %v54_v49 = vadd.f32 %v212_v48, %v47_v45  ;;  %v213_v50 = vsel %vm58_vm7, 1.0, %v322_v4  ;;  %v214_v53 = vsel %vm65_vm8, 1.0, %v322_v4 }
  0x8b   :  { %v61_v52 = vadd.f32 %v213_v50, %v54_v49 }
  0x8c   :  { %v71_v54 = vpop.permute.xlu1 %70  ;;  %v85_v57 = vpop.permute.xlu0 %84 }
  0x8d   :  { %vm72_vm9 = vcmp.eq.s32.totalorder %v208_v51, %v71_v54  ;;  %v68_v55 = vadd.f32 %v214_v53, %v61_v52  ;;  %vm86_vm11 = vcmp.eq.s32.totalorder %v208_v51, %v85_v57 }
  0x8e   :  { %v215_v56 = vsel %vm72_vm9, 1.0, %v322_v4  ;;  %v217_v62 = vsel %vm86_vm11, 1.0, %v322_v4 }
  0x8f   :  { %v75_v59 = vadd.f32 %v215_v56, %v68_v55 }
  0x91   :  { %v78_v58 = vpop.permute.xlu1 %77 }
  0x92   :  { %vm79_vm10 = vcmp.eq.s32.totalorder %v208_v51, %v78_v58 }
  0x93   :  { %v216_v60 = vsel %vm79_vm10, 1.0, %v322_v4 }
  0x94   :  { %v82_v61 = vadd.f32 %v216_v60, %v75_v59 }
  0x96   :  { %v92_v63 = vpop.permute.xlu1 %91  ;;  %v89_v0 = vadd.f32 %v217_v62, %v82_v61 }
  0x97   :  { %vm93_vm12 = vcmp.eq.s32.totalorder %v208_v51, %v92_v63 }
  0x98   :  { %v218_v1 = vsel %vm93_vm12, 1.0, %v322_v4 }
  0x99   :  { %v96_v3 = vadd.f32 %v218_v1, %v89_v0 }
  0x9b   :  { %v99_v2 = vpop.permute.xlu1 %98 }
  0x9c   :  { %vm100_vm13 = vcmp.eq.s32.totalorder %v208_v51, %v99_v2 }
  0x9d   :  { %v219_v5 = vsel %vm100_vm13, 1.0, %v322_v4 }
  0x9e   :  { %v103_v6 = vadd.f32 %v219_v5, %v96_v3 }
  0xa0   :  { %270 = vmatmul.mubr.f32.vlgmr.msra.gmra.mxu0 %v103_v6 }
 0x160   :  { %v186_v7 = vpop.f32.mrf.mxu0 }
 0x161   :  { %191 = vst.msk [vmem:[#allocation2] sm:$0xff] %vm190_vm14, %v186_v7 }
 0x162   :  { %v271_v8 = vpop.f32.mrf.mxu0 }
 0x163   :  { %309 = shalt.err (!%p306_p4)
}
 0x164   :  { %201 = dma.vmem_to_hbm [thread:$0]  %s199_s2, 128, %s456_s3, [#allocation3]  }
 0x165   :  { %318 = dma.done.wait [#allocation3], 128  }
 0x166   :  { %319 = vsyncadd [#allocation3], 4294967168 }
 0x167   :  { %205 = vsyncpa [#allocation3], 1 }

</bundles_post_ra>
